<compile_context>
chip_gen: v6e
topology: v6e:2x2x1
jax: 0.10.0
libtpu: 0.0.40
codegen_flags: <defaults>
</compile_context>

<pallas_src>
import math

import jax
import jax.numpy as jnp
from jax.experimental import pallas as pl
from jax.experimental.pallas import tpu as pltpu

# ---- Model hyper-parameters (small, consistent with the module) ----
IN_DIM = 32
QK_DIM = 32
V_DIM = 32
N_HEADS = 4
DH_QK = QK_DIM // N_HEADS
DH_V = V_DIM // N_HEADS
ATTN_DROPOUT = 0.0                 # nn.Dropout(p=0.0) -> identity in forward
SCALE = math.sqrt(QK_DIM)          # module uses sqrt(self.dk) with dk = qk_dim (NOT per-head)


def _device_kind():
    try:
        return jax.devices()[0].device_kind.lower()
    except Exception:
        return ""


def _has_two_tensorcores():
    # v7x packs 2 TensorCores per chip; v5e/v6e expose 1 -> a second grid step there
    # would be pure ~0.35us per-step overhead.
    return "v7" in _device_kind()


def _matmul_dtype():
    # bf16 MXU operands on v6e/v7x; f32 elsewhere.  Element-wise softmax math is f32
    # on all generations regardless of this choice.
    kind = _device_kind()
    return jnp.bfloat16 if ("v6" in kind or "v7" in kind) else jnp.float32


def mha_kernel(q_ref, k_ref, v_ref, a_ref, bwo_ref, bias_ref, out_ref, attn_ref):
    """One grid step = one block of `bb` batch elements (fully batched, no batch loop).

    q_ref   : (bb, Nq,  IN_DIM)     a_ref   : (IN_DIM, H*IN_DIM)  = concat_h (Wq_h/scale) @ Wk_h^T
    k_ref   : (bb, Nkv, IN_DIM)     bwo_ref : (H*IN_DIM, IN_DIM)  = stack_h  Wv_h @ Wo_h
    v_ref   : (bb, Nkv, IN_DIM)     bias_ref: (1, IN_DIM)          (float32)
    out_ref : (bb, Nq, IN_DIM)
    attn_ref: (bb, Nq, H*Nkv)       lane-dense; wrapper reshapes to (B, H, Nq, Nkv)
    """
    bb, n_q, _ = q_ref.shape
    n_kv = k_ref.shape[1]
    mm_dtype = a_ref.dtype                      # bf16 on v6e/v7x, f32 otherwise

    k = k_ref[...]                              # (bb, n_kv, IN_DIM)
    v = v_ref[...]                              # (bb, n_kv, IN_DIM)

    # Fused query-side projection: ONE MXU matmul covers all heads and all batch rows
    # of this block (32 -> 128 lanes, full lane occupancy).
    q_flat = q_ref[...].reshape(bb * n_q, IN_DIM)                          # leading reshape: free
    qa = jnp.dot(q_flat, a_ref[...], preferred_element_type=jnp.float32)   # (bb*n_q, H*IN_DIM)
    qa = qa.astype(mm_dtype).reshape(bb, n_q, N_HEADS * IN_DIM)

    p_heads = []      # softmax probabilities, concatenated along lanes at the end
    ctx_heads = []    # per-head context p_h @ v (raw value basis; Wv folded into bwo_ref)
    for h in range(N_HEADS):                                               # H = 4, static
        qa_h = qa[:, :, h * IN_DIM:(h + 1) * IN_DIM]                       # (bb, n_q, IN_DIM)
        # Scores: contract the feature dim of both operands directly — no k.T transpose,
        # 1/sqrt(dk) already folded into A_cat.
        s = jnp.einsum("bqd,bkd->bqk", qa_h, k,
                       preferred_element_type=jnp.float32)                 # (bb, n_q, n_kv)
        # TODO(synk): optional boolean mask (masked_fill with -1e9) not wired in; this
        # kernel implements the mask=None path only.
        m = jnp.max(s, axis=-1, keepdims=True)
        e = jnp.exp(s - m)
        denom = jnp.sum(e, axis=-1, keepdims=True)
        p = e * (1.0 / denom)            # exact reciprocal: stored rows sum to 1
        p_heads.append(p)
        # Dropout p=0.0 -> identity (attn_weights == attention probabilities).
        ctx_heads.append(jnp.einsum("bqk,bkd->bqd", p.astype(mm_dtype), v,
                                    preferred_element_type=jnp.float32))   # (bb, n_q, IN_DIM)

    # Lane-dense attention-weights store: ONE fused store of (bb, n_q, H*n_kv).
    attn_ref[...] = jnp.concatenate(p_heads, axis=-1).astype(attn_ref.dtype)

    # Fused output projection: single K = H*IN_DIM = 128 contraction, bias added once.
    ctx_cat = jnp.concatenate(ctx_heads, axis=-1).astype(mm_dtype)         # (bb, n_q, 128)
    out = jnp.dot(ctx_cat.reshape(bb * n_q, N_HEADS * IN_DIM), bwo_ref[...],
                  preferred_element_type=jnp.float32)                      # (bb*n_q, IN_DIM)
    out = out + bias_ref[...]                                              # (1, IN_DIM) broadcast
    out_ref[...] = out.reshape(bb, n_q, IN_DIM).astype(out_ref.dtype)


def prepare_mha_params(wq_t, wk_t, wv_t, wo_t, bo, matmul_dtype=jnp.float32):
    """Fold the per-head weights once (parameter-prep time, in float32; cast last).

    wq_t/wk_t: (IN_DIM, QK_DIM), wv_t: (IN_DIM, V_DIM), wo_t: (V_DIM, IN_DIM), bo: (IN_DIM,)
    Returns:
      a_cat   (IN_DIM, H*IN_DIM):  a_cat[:, h*IN_DIM:(h+1)*IN_DIM] = (Wq_h / sqrt(dk)) @ Wk_h^T
      bwo_cat (H*IN_DIM, IN_DIM):  rows h*IN_DIM:(h+1)*IN_DIM      = Wv_h @ Wo_h
      bias_row(1, IN_DIM)          float32
    """
    wq_h = (wq_t.astype(jnp.float32) * (1.0 / SCALE)).reshape(IN_DIM, N_HEADS, DH_QK)
    wk_h = wk_t.astype(jnp.float32).reshape(IN_DIM, N_HEADS, DH_QK)
    wv_h = wv_t.astype(jnp.float32).reshape(IN_DIM, N_HEADS, DH_V)
    wo_h = wo_t.astype(jnp.float32).reshape(N_HEADS, DH_V, IN_DIM)
    a_cat = jnp.einsum("ehd,fhd->ehf", wq_h, wk_h).reshape(IN_DIM, N_HEADS * IN_DIM)
    bwo_cat = jnp.einsum("ehd,hdf->hef", wv_h, wo_h).reshape(N_HEADS * IN_DIM, IN_DIM)
    bias_row = bo.reshape(1, IN_DIM).astype(jnp.float32)
    return a_cat.astype(matmul_dtype), bwo_cat.astype(matmul_dtype), bias_row


def multi_head_attention(queries, keys, values, a_cat, bwo_cat, bias_row):
    """queries: (B, Nq, IN_DIM), keys/values: (B, Nkv, IN_DIM); folded params from
    prepare_mha_params.  Returns (output (B, Nq, IN_DIM), attn (B, H, Nq, Nkv))."""
    B, Nq, _ = queries.shape
    _, Nkv, _ = keys.shape

    # Generation-aware batch split: 2 grid steps only when a 2nd TensorCore exists (v7x).
    num_blocks = 2 if (_has_two_tensorcores() and B >= 2 and B % 2 == 0) else 1
    bb = B // num_blocks

    mm_dtype = a_cat.dtype
    q = queries.astype(mm_dtype)
    k = keys.astype(mm_dtype)
    v = values.astype(mm_dtype)

    out_shapes = (
        jax.ShapeDtypeStruct((B, Nq, IN_DIM), jnp.float32),
        # Lane-dense attention layout; reshaped/transposed to (B, H, Nq, Nkv) below.
        jax.ShapeDtypeStruct((B, Nq, N_HEADS * Nkv), jnp.float32),
    )

    # TODO(synk): for realistic sequence lengths, switch to a kv-tiled (flash-style)
    # layout, optionally emit attn in bf16 (or skip it), and re-derive tile sizes /
    # vmem_limit_bytes against v7x's 64 MiB VMEM; at these tiny shapes the defaults fit.
    out, attn_cat = pl.pallas_call(
        mha_kernel,
        out_shape=out_shapes,
        grid_spec=pltpu.PrefetchScalarGridSpec(
            num_scalar_prefetch=0,
            grid=(num_blocks,),
            in_specs=[
                pl.BlockSpec((bb, Nq, IN_DIM), lambda i: (i, 0, 0)),      # queries block
                pl.BlockSpec((bb, Nkv, IN_DIM), lambda i: (i, 0, 0)),     # keys block
                pl.BlockSpec((bb, Nkv, IN_DIM), lambda i: (i, 0, 0)),     # values block
                # Constant index_maps -> fetched once, reused across the (<=2) steps.
                pl.BlockSpec((IN_DIM, N_HEADS * IN_DIM), lambda i: (0, 0)),   # A_cat
                pl.BlockSpec((N_HEADS * IN_DIM, IN_DIM), lambda i: (0, 0)),   # Bwo_cat
                pl.BlockSpec((1, IN_DIM), lambda i: (0, 0)),                  # bias
            ],
            out_specs=[
                pl.BlockSpec((bb, Nq, IN_DIM), lambda i: (i, 0, 0)),
                pl.BlockSpec((bb, Nq, N_HEADS * Nkv), lambda i: (i, 0, 0)),
            ],
        ),
        compiler_params=pltpu.CompilerParams(dimension_semantics=("parallel",)),
    )(q, k, v, a_cat, bwo_cat, bias_row)

    # Free layout plumbing in the wrapper: (B, Nq, H*Nkv) -> (B, H, Nq, Nkv).
    attn = attn_cat.reshape(B, Nq, N_HEADS, Nkv).transpose(0, 2, 1, 3)
    return out, attn


def reference(queries, keys, values, wq_t, wk_t, wv_t, wo_t, bo):
    """Pure-JAX reference matching the PyTorch forward (mask=None, dropout=0)."""
    B, Nq, _ = queries.shape
    _, Nkv, _ = keys.shape
    Q = (queries @ wq_t).reshape(B, Nq, N_HEADS, DH_QK).transpose(0, 2, 1, 3)
    K = (keys @ wk_t).reshape(B, Nkv, N_HEADS, DH_QK).transpose(0, 2, 1, 3)
    V = (values @ wv_t).reshape(B, Nkv, N_HEADS, DH_V).transpose(0, 2, 1, 3)
    s = jnp.einsum("bhqd,bhkd->bhqk", Q, K) / SCALE
    p = jax.nn.softmax(s, axis=-1)
    ctx = jnp.einsum("bhqk,bhkd->bhqd", p, V).transpose(0, 2, 1, 3).reshape(B, Nq, V_DIM)
    return ctx @ wo_t + bo, p


if __name__ == "__main__":
    B, Nq, Nkv = 2, 8, 8
    key = jax.random.PRNGKey(0)
    k1, k2, k3, k4, k5, k6, k7 = jax.random.split(key, 7)

    # Deterministic parameter init (shapes follow the module's __init__).
    std_qk = math.sqrt(2.0 / (IN_DIM + QK_DIM // N_HEADS))
    wq_t = std_qk * jax.random.normal(k1, (IN_DIM, QK_DIM), jnp.float32)
    wk_t = std_qk * jax.random.normal(k2, (IN_DIM, QK_DIM), jnp.float32)
    # V_linear / Wo default torch init ~ uniform(-1/sqrt(fan_in), 1/sqrt(fan_in))
    wv_t = jax.random.uniform(k3, (IN_DIM, V_DIM), jnp.float32,
                              -1.0 / math.sqrt(IN_DIM), 1.0 / math.sqrt(IN_DIM))
    wo_t = jax.random.uniform(k4, (V_DIM, IN_DIM), jnp.float32,
                              -1.0 / math.sqrt(V_DIM), 1.0 / math.sqrt(V_DIM))
    bo = jnp.zeros((IN_DIM,), jnp.float32)  # nn.init.zeros_(self.Wo.bias)

    queries = jax.random.normal(k5, (B, Nq, IN_DIM), jnp.float32)
    keys_in = jax.random.normal(k6, (B, Nkv, IN_DIM), jnp.float32)
    values_in = jax.random.normal(k7, (B, Nkv, IN_DIM), jnp.float32)

    # Fold weights once (f32), cast only the folded matrices to the MXU operand dtype.
    mm_dtype = _matmul_dtype()
    a_cat, bwo_cat, bias_row = prepare_mha_params(wq_t, wk_t, wv_t, wo_t, bo, mm_dtype)
    out, attn_w = multi_head_attention(queries, keys_in, values_in, a_cat, bwo_cat, bias_row)
    out = jax.block_until_ready(out)
    attn_w = jax.block_until_ready(attn_w)

    ref_out, ref_attn = reference(queries, keys_in, values_in, wq_t, wk_t, wv_t, wo_t, bo)
    assert out.shape == (B, Nq, IN_DIM)
    assert attn_w.shape == (B, N_HEADS, Nq, Nkv)
    # f32 path: tight tolerance (exact reciprocal, folded-weight order only).
    # bf16-MXU path (v6e/v7x): operand rounding -> relaxed tolerance.
    tol = 5e-2 if mm_dtype == jnp.bfloat16 else 2e-3
    assert jnp.allclose(out, ref_out, atol=tol, rtol=tol)
    assert jnp.allclose(attn_w, ref_attn, atol=tol, rtol=tol)

    print("KERNEL_OK")
</pallas_src>

<mosaic_0001>
module attributes {stable_mosaic.version = 11 : i64} {
  func.func @mha_kernel(%arg0: i32, %arg1: memref<2x8x32xf32, #tpu.memory_space<vmem>>, %arg2: memref<2x8x32xf32, #tpu.memory_space<vmem>>, %arg3: memref<2x8x32xf32, #tpu.memory_space<vmem>>, %arg4: memref<32x128xf32, #tpu.memory_space<vmem>>, %arg5: memref<128x32xf32, #tpu.memory_space<vmem>>, %arg6: memref<1x32xf32, #tpu.memory_space<vmem>>, %arg7: memref<2x8x32xf32, #tpu.memory_space<vmem>>, %arg8: memref<2x8x32xf32, #tpu.memory_space<vmem>>) attributes {dimension_semantics = [#tpu.dimension_semantics<parallel>], iteration_bounds = array<i64: 1>, scalar_prefetch = 0 : i64, scratch_operands = 0 : i64, tpu.core_type = #tpu.core_type<tc>, window_params = [{transform_indices = @transform_0, window_bounds = array<i64: 2, 8, 32>}, {transform_indices = @transform_1, window_bounds = array<i64: 2, 8, 32>}, {transform_indices = @transform_2, window_bounds = array<i64: 2, 8, 32>}, {pipeline_mode = #tpu.pipeline_mode<synchronous>, transform_indices = @transform_3, window_bounds = array<i64: 32, 128>}, {pipeline_mode = #tpu.pipeline_mode<synchronous>, transform_indices = @transform_4, window_bounds = array<i64: 128, 32>}, {pipeline_mode = #tpu.pipeline_mode<synchronous>, transform_indices = @transform_5, window_bounds = array<i64: 1, 32>}, {transform_indices = @transform_6, window_bounds = array<i64: 2, 8, 32>}, {transform_indices = @transform_7, window_bounds = array<i64: 2, 8, 32>}]} {
    %c0 = arith.constant 0 : index
    %c0_0 = arith.constant 0 : index
    %c0_1 = arith.constant 0 : index
    %0 = vector.load %arg2[%c0, %c0_0, %c0_1] : memref<2x8x32xf32, #tpu.memory_space<vmem>>, vector<2x8x32xf32>
    %c0_2 = arith.constant 0 : index
    %c0_3 = arith.constant 0 : index
    %c0_4 = arith.constant 0 : index
    %1 = vector.load %arg3[%c0_2, %c0_3, %c0_4] : memref<2x8x32xf32, #tpu.memory_space<vmem>>, vector<2x8x32xf32>
    %c0_5 = arith.constant 0 : index
    %c0_6 = arith.constant 0 : index
    %c0_7 = arith.constant 0 : index
    %2 = vector.load %arg1[%c0_5, %c0_6, %c0_7] : memref<2x8x32xf32, #tpu.memory_space<vmem>>, vector<2x8x32xf32>
    %3 = vector.shape_cast %2 : vector<2x8x32xf32> to vector<16x32xf32>
    %c0_8 = arith.constant 0 : index
    %c0_9 = arith.constant 0 : index
    %4 = vector.load %arg4[%c0_8, %c0_9] : memref<32x128xf32, #tpu.memory_space<vmem>>, vector<32x128xf32>
    %cst = arith.constant dense<0.000000e+00> : vector<16x128xf32>
    %5 = tpu.matmul %3, %4, %cst {dimension_numbers = #tpu.dot_dimension_numbers<[1], [0], [0], [1], [0, 0, 1, 1], [], []>} : vector<16x32xf32>, vector<32x128xf32>, vector<16x128xf32> -> vector<16x128xf32>
    %6 = vector.shape_cast %5 : vector<16x128xf32> to vector<2x8x128xf32>
    %7 = vector.extract_strided_slice %6 {offsets = [0, 0, 0], sizes = [2, 8, 32], strides = [1, 1, 1]} : vector<2x8x128xf32> to vector<2x8x32xf32>
    "tpu.trace_start"() <{level = 10 : i32, message = "bqd,bkd->bqk"}> : () -> ()
    %cst_10 = arith.constant dense<0.000000e+00> : vector<2x8x8xf32>
    %8 = tpu.matmul %7, %0, %cst_10 {dimension_numbers = #tpu.dot_dimension_numbers<[2], [2], [1], [1], [0, 0, 0, 1, 1, 1], [0], [0]>} : vector<2x8x32xf32>, vector<2x8x32xf32>, vector<2x8x8xf32> -> vector<2x8x8xf32>
    "tpu.trace_stop"() : () -> ()
    %cst_11 = arith.constant dense<0xFF800000> : vector<2x8xf32>
    %9 = vector.multi_reduction <maximumf>, %8, %cst_11 [2] : vector<2x8x8xf32> to vector<2x8xf32>
    %10 = vector.shape_cast %9 : vector<2x8xf32> to vector<2x8x1xf32>
    %11 = vector.broadcast %10 : vector<2x8x1xf32> to vector<2x8x8xf32>
    %12 = arith.subf %8, %11 : vector<2x8x8xf32>
    %13 = math.exp %12 : vector<2x8x8xf32>
    %cst_12 = arith.constant dense<0.000000e+00> : vector<2x8xf32>
    %14 = vector.multi_reduction <add>, %13, %cst_12 [2] : vector<2x8x8xf32> to vector<2x8xf32>
    %15 = vector.shape_cast %14 : vector<2x8xf32> to vector<2x8x1xf32>
    %cst_13 = arith.constant 1.000000e+00 : f32
    %16 = vector.broadcast %cst_13 : f32 to vector<2x8x1xf32>
    %17 = arith.divf %16, %15 : vector<2x8x1xf32>
    %18 = vector.broadcast %17 : vector<2x8x1xf32> to vector<2x8x8xf32>
    %19 = arith.mulf %13, %18 : vector<2x8x8xf32>
    "tpu.trace_start"() <{level = 10 : i32, message = "bqk,bkd->bqd"}> : () -> ()
    %cst_14 = arith.constant dense<0.000000e+00> : vector<2x8x32xf32>
    %20 = tpu.matmul %19, %1, %cst_14 {dimension_numbers = #tpu.dot_dimension_numbers<[2], [1], [1], [2], [0, 0, 0, 1, 1, 2], [0], [0]>} : vector<2x8x8xf32>, vector<2x8x32xf32>, vector<2x8x32xf32> -> vector<2x8x32xf32>
    "tpu.trace_stop"() : () -> ()
    %21 = vector.extract_strided_slice %6 {offsets = [0, 0, 32], sizes = [2, 8, 32], strides = [1, 1, 1]} : vector<2x8x128xf32> to vector<2x8x32xf32>
    "tpu.trace_start"() <{level = 10 : i32, message = "bqd,bkd->bqk"}> : () -> ()
    %cst_15 = arith.constant dense<0.000000e+00> : vector<2x8x8xf32>
    %22 = tpu.matmul %21, %0, %cst_15 {dimension_numbers = #tpu.dot_dimension_numbers<[2], [2], [1], [1], [0, 0, 0, 1, 1, 1], [0], [0]>} : vector<2x8x32xf32>, vector<2x8x32xf32>, vector<2x8x8xf32> -> vector<2x8x8xf32>
    "tpu.trace_stop"() : () -> ()
    %cst_16 = arith.constant dense<0xFF800000> : vector<2x8xf32>
    %23 = vector.multi_reduction <maximumf>, %22, %cst_16 [2] : vector<2x8x8xf32> to vector<2x8xf32>
    %24 = vector.shape_cast %23 : vector<2x8xf32> to vector<2x8x1xf32>
    %25 = vector.broadcast %24 : vector<2x8x1xf32> to vector<2x8x8xf32>
    %26 = arith.subf %22, %25 : vector<2x8x8xf32>
    %27 = math.exp %26 : vector<2x8x8xf32>
    %cst_17 = arith.constant dense<0.000000e+00> : vector<2x8xf32>
    %28 = vector.multi_reduction <add>, %27, %cst_17 [2] : vector<2x8x8xf32> to vector<2x8xf32>
    %29 = vector.shape_cast %28 : vector<2x8xf32> to vector<2x8x1xf32>
    %cst_18 = arith.constant 1.000000e+00 : f32
    %30 = vector.broadcast %cst_18 : f32 to vector<2x8x1xf32>
    %31 = arith.divf %30, %29 : vector<2x8x1xf32>
    %32 = vector.broadcast %31 : vector<2x8x1xf32> to vector<2x8x8xf32>
    %33 = arith.mulf %27, %32 : vector<2x8x8xf32>
    "tpu.trace_start"() <{level = 10 : i32, message = "bqk,bkd->bqd"}> : () -> ()
    %cst_19 = arith.constant dense<0.000000e+00> : vector<2x8x32xf32>
    %34 = tpu.matmul %33, %1, %cst_19 {dimension_numbers = #tpu.dot_dimension_numbers<[2], [1], [1], [2], [0, 0, 0, 1, 1, 2], [0], [0]>} : vector<2x8x8xf32>, vector<2x8x32xf32>, vector<2x8x32xf32> -> vector<2x8x32xf32>
    "tpu.trace_stop"() : () -> ()
    %35 = vector.extract_strided_slice %6 {offsets = [0, 0, 64], sizes = [2, 8, 32], strides = [1, 1, 1]} : vector<2x8x128xf32> to vector<2x8x32xf32>
    "tpu.trace_start"() <{level = 10 : i32, message = "bqd,bkd->bqk"}> : () -> ()
    %cst_20 = arith.constant dense<0.000000e+00> : vector<2x8x8xf32>
    %36 = tpu.matmul %35, %0, %cst_20 {dimension_numbers = #tpu.dot_dimension_numbers<[2], [2], [1], [1], [0, 0, 0, 1, 1, 1], [0], [0]>} : vector<2x8x32xf32>, vector<2x8x32xf32>, vector<2x8x8xf32> -> vector<2x8x8xf32>
    "tpu.trace_stop"() : () -> ()
    %cst_21 = arith.constant dense<0xFF800000> : vector<2x8xf32>
    %37 = vector.multi_reduction <maximumf>, %36, %cst_21 [2] : vector<2x8x8xf32> to vector<2x8xf32>
    %38 = vector.shape_cast %37 : vector<2x8xf32> to vector<2x8x1xf32>
    %39 = vector.broadcast %38 : vector<2x8x1xf32> to vector<2x8x8xf32>
    %40 = arith.subf %36, %39 : vector<2x8x8xf32>
    %41 = math.exp %40 : vector<2x8x8xf32>
    %cst_22 = arith.constant dense<0.000000e+00> : vector<2x8xf32>
    %42 = vector.multi_reduction <add>, %41, %cst_22 [2] : vector<2x8x8xf32> to vector<2x8xf32>
    %43 = vector.shape_cast %42 : vector<2x8xf32> to vector<2x8x1xf32>
    %cst_23 = arith.constant 1.000000e+00 : f32
    %44 = vector.broadcast %cst_23 : f32 to vector<2x8x1xf32>
    %45 = arith.divf %44, %43 : vector<2x8x1xf32>
    %46 = vector.broadcast %45 : vector<2x8x1xf32> to vector<2x8x8xf32>
    %47 = arith.mulf %41, %46 : vector<2x8x8xf32>
    "tpu.trace_start"() <{level = 10 : i32, message = "bqk,bkd->bqd"}> : () -> ()
    %cst_24 = arith.constant dense<0.000000e+00> : vector<2x8x32xf32>
    %48 = tpu.matmul %47, %1, %cst_24 {dimension_numbers = #tpu.dot_dimension_numbers<[2], [1], [1], [2], [0, 0, 0, 1, 1, 2], [0], [0]>} : vector<2x8x8xf32>, vector<2x8x32xf32>, vector<2x8x32xf32> -> vector<2x8x32xf32>
    "tpu.trace_stop"() : () -> ()
    %49 = vector.extract_strided_slice %6 {offsets = [0, 0, 96], sizes = [2, 8, 32], strides = [1, 1, 1]} : vector<2x8x128xf32> to vector<2x8x32xf32>
    "tpu.trace_start"() <{level = 10 : i32, message = "bqd,bkd->bqk"}> : () -> ()
    %cst_25 = arith.constant dense<0.000000e+00> : vector<2x8x8xf32>
    %50 = tpu.matmul %49, %0, %cst_25 {dimension_numbers = #tpu.dot_dimension_numbers<[2], [2], [1], [1], [0, 0, 0, 1, 1, 1], [0], [0]>} : vector<2x8x32xf32>, vector<2x8x32xf32>, vector<2x8x8xf32> -> vector<2x8x8xf32>
    "tpu.trace_stop"() : () -> ()
    %cst_26 = arith.constant dense<0xFF800000> : vector<2x8xf32>
    %51 = vector.multi_reduction <maximumf>, %50, %cst_26 [2] : vector<2x8x8xf32> to vector<2x8xf32>
    %52 = vector.shape_cast %51 : vector<2x8xf32> to vector<2x8x1xf32>
    %53 = vector.broadcast %52 : vector<2x8x1xf32> to vector<2x8x8xf32>
    %54 = arith.subf %50, %53 : vector<2x8x8xf32>
    %55 = math.exp %54 : vector<2x8x8xf32>
    %cst_27 = arith.constant dense<0.000000e+00> : vector<2x8xf32>
    %56 = vector.multi_reduction <add>, %55, %cst_27 [2] : vector<2x8x8xf32> to vector<2x8xf32>
    %57 = vector.shape_cast %56 : vector<2x8xf32> to vector<2x8x1xf32>
    %cst_28 = arith.constant 1.000000e+00 : f32
    %58 = vector.broadcast %cst_28 : f32 to vector<2x8x1xf32>
    %59 = arith.divf %58, %57 : vector<2x8x1xf32>
    %60 = vector.broadcast %59 : vector<2x8x1xf32> to vector<2x8x8xf32>
    %61 = arith.mulf %55, %60 : vector<2x8x8xf32>
    "tpu.trace_start"() <{level = 10 : i32, message = "bqk,bkd->bqd"}> : () -> ()
    %cst_29 = arith.constant dense<0.000000e+00> : vector<2x8x32xf32>
    %62 = tpu.matmul %61, %1, %cst_29 {dimension_numbers = #tpu.dot_dimension_numbers<[2], [1], [1], [2], [0, 0, 0, 1, 1, 2], [0], [0]>} : vector<2x8x8xf32>, vector<2x8x32xf32>, vector<2x8x32xf32> -> vector<2x8x32xf32>
    "tpu.trace_stop"() : () -> ()
    %63 = tpu.concatenate %19, %33, %47, %61 in 2 : vector<2x8x8xf32>, vector<2x8x8xf32>, vector<2x8x8xf32>, vector<2x8x8xf32> -> vector<2x8x32xf32>
    %c0_30 = arith.constant 0 : index
    %c0_31 = arith.constant 0 : index
    %c0_32 = arith.constant 0 : index
    %64 = vector.load %arg8[%c0_30, %c0_31, %c0_32] : memref<2x8x32xf32, #tpu.memory_space<vmem>>, vector<2x8x32xf32>
    tpu.vector_store %arg8[%c0_30, %c0_31, %c0_32], %63 {strides = array<i32>} : memref<2x8x32xf32, #tpu.memory_space<vmem>>, vector<2x8x32xf32>,
    %65 = tpu.concatenate %20, %34, %48, %62 in 2 : vector<2x8x32xf32>, vector<2x8x32xf32>, vector<2x8x32xf32>, vector<2x8x32xf32> -> vector<2x8x128xf32>
    %66 = vector.shape_cast %65 : vector<2x8x128xf32> to vector<16x128xf32>
    %c0_33 = arith.constant 0 : index
    %c0_34 = arith.constant 0 : index
    %67 = vector.load %arg5[%c0_33, %c0_34] : memref<128x32xf32, #tpu.memory_space<vmem>>, vector<128x32xf32>
    %cst_35 = arith.constant dense<0.000000e+00> : vector<16x32xf32>
    %68 = tpu.matmul %66, %67, %cst_35 {dimension_numbers = #tpu.dot_dimension_numbers<[1], [0], [0], [1], [0, 0, 1, 1], [], []>} : vector<16x128xf32>, vector<128x32xf32>, vector<16x32xf32> -> vector<16x32xf32>
    %c0_36 = arith.constant 0 : index
    %c0_37 = arith.constant 0 : index
    %69 = vector.load %arg6[%c0_36, %c0_37] : memref<1x32xf32, #tpu.memory_space<vmem>>, vector<1x32xf32>
    %70 = vector.broadcast %69 : vector<1x32xf32> to vector<16x32xf32>
    %71 = arith.addf %68, %70 : vector<16x32xf32>
    %72 = vector.shape_cast %71 : vector<16x32xf32> to vector<2x8x32xf32>
    %c0_38 = arith.constant 0 : index
    %c0_39 = arith.constant 0 : index
    %c0_40 = arith.constant 0 : index
    %73 = vector.load %arg7[%c0_38, %c0_39, %c0_40] : memref<2x8x32xf32, #tpu.memory_space<vmem>>, vector<2x8x32xf32>
    tpu.vector_store %arg7[%c0_38, %c0_39, %c0_40], %72 {strides = array<i32>} : memref<2x8x32xf32, #tpu.memory_space<vmem>>, vector<2x8x32xf32>,
    return
  }
  func.func @transform_0(%arg0: i32) -> (i32, i32, i32) {
    %c0_i32 = arith.constant 0 : i32
    %c0_i32_0 = arith.constant 0 : i32
    %c0_i32_1 = arith.constant 0 : i32
    return %arg0, %c0_i32, %c0_i32_0 : i32, i32, i32
  }
  func.func @transform_1(%arg0: i32) -> (i32, i32, i32) {
    %c0_i32 = arith.constant 0 : i32
    %c0_i32_0 = arith.constant 0 : i32
    %c0_i32_1 = arith.constant 0 : i32
    return %arg0, %c0_i32, %c0_i32_0 : i32, i32, i32
  }
  func.func @transform_2(%arg0: i32) -> (i32, i32, i32) {
    %c0_i32 = arith.constant 0 : i32
    %c0_i32_0 = arith.constant 0 : i32
    %c0_i32_1 = arith.constant 0 : i32
    return %arg0, %c0_i32, %c0_i32_0 : i32, i32, i32
  }
  func.func @transform_3(%arg0: i32) -> (i32, i32) {
    %c0_i32 = arith.constant 0 : i32
    %c0_i32_0 = arith.constant 0 : i32
    %c0_i32_1 = arith.constant 0 : i32
    return %c0_i32, %c0_i32_0 : i32, i32
  }
  func.func @transform_4(%arg0: i32) -> (i32, i32) {
    %c0_i32 = arith.constant 0 : i32
    %c0_i32_0 = arith.constant 0 : i32
    %c0_i32_1 = arith.constant 0 : i32
    return %c0_i32, %c0_i32_0 : i32, i32
  }
  func.func @transform_5(%arg0: i32) -> (i32, i32) {
    %c0_i32 = arith.constant 0 : i32
    %c0_i32_0 = arith.constant 0 : i32
    %c0_i32_1 = arith.constant 0 : i32
    return %c0_i32, %c0_i32_0 : i32, i32
  }
  func.func @transform_6(%arg0: i32) -> (i32, i32, i32) {
    %c0_i32 = arith.constant 0 : i32
    %c0_i32_0 = arith.constant 0 : i32
    %c0_i32_1 = arith.constant 0 : i32
    return %arg0, %c0_i32, %c0_i32_0 : i32, i32, i32
  }
  func.func @transform_7(%arg0: i32) -> (i32, i32, i32) {
    %c0_i32 = arith.constant 0 : i32
    %c0_i32_0 = arith.constant 0 : i32
    %c0_i32_1 = arith.constant 0 : i32
    return %arg0, %c0_i32, %c0_i32_0 : i32, i32, i32
  }
}

</mosaic_0001>

<bundles_post_ra>
// kernel: tpu_custom_call.1
= control target key start
LH: loop header
LB: loop body
LE: loop exit
PB: predicated region body
PF: predicated region fallthrough
CT: control target
= control target key end

     0   :  { %13 = vsyncpa [#allocation3], 0  ;;  %vm37_vm0 = vcmask 261120   ;;  %v1899_v3 = vmov 0.0   ;;  %s2231_s0 = inlined_call_operand.vmem [shape: f32[2,8,32], index: 0, kind: input, shape index: {}]   ;;  %s2232_s1 = inlined_call_operand.vmem [shape: f32[2,8,32], index: 1, kind: input, shape index: {}]   ;;  %s2233_s2 = inlined_call_operand.vmem [shape: f32[2,8,32], index: 2, kind: input, shape index: {}]   ;;  %s2234_s3 = inlined_call_operand.vmem [shape: f32[32,128], index: 3, kind: input, shape index: {}]   ;;  %s2235_s4 = inlined_call_operand.vmem [shape: f32[128,32], index: 4, kind: input, shape index: {}]   ;;  %s2236_s5 = inlined_call_operand.vmem [shape: f32[1,32], index: 5, kind: input, shape index: {}]   ;;  %s2237_s6 = inlined_call_operand.hbm [shape: f32[2,8,32], index: 6, kind: output, shape index: {0}]   ;;  %s2238_s7 = inlined_call_operand.hbm [shape: f32[2,8,32], index: 7, kind: output, shape index: {1}]  }
   0x1   :  { %v36_v0 = vld [vmem:[%s2234_s3 + $0x18] sm:$0xff]  ;;  %v35_v1 = vld [vmem:[%s2234_s3 + $0x10] sm:$0xff]  ;;  %v31_v2 = vld [vmem:[%s2231_s0] sm:$0xff]  ;;  %1712 = vmatprep.subr.mxu0 %v1899_v3 }
   0x2   :  { %1671 = vmatprep.subr.mxu1 %v36_v0  ;;  %v34_v4 = vld [vmem:[%s2234_s3 + $0x8] sm:$0xff]  ;;  %1679 = vmatprep.mubr.msk.f32.mxu1 %vm37_vm0, %v31_v2 }
   0x3   :  { %1672 = vmatpush3.msra.mxu1 %v36_v0 }
   0x4   :  { %14 = vsyncpa [#allocation5], 0  ;;  %1673 = vmatprep.subr.mxu1 %v35_v1  ;;  %v33_v5 = vld [vmem:[%s2234_s3] sm:$0xff]  ;;  %v32_v6 = vld [vmem:[%s2231_s0 + $0x8] sm:$0xff]  ;;  %vm1900_vm1 = vmmov 0   ;;  %vm271_vm2 = vcmask 64512  }
   0x5   :  { %1674 = vmatpush3.msra.mxu1 %v35_v1  ;;  %v1973_v7 = vld [vmem:[%s2232_s1] sm:$0xff]  ;;  %1714 = vmatprep.mubr.msk.f32.mxu0 %vm1900_vm1, %v1899_v3  ;;  %v1989_v9 = vld [vmem:[%s2232_s1 + $0x8] sm:$0xff]  ;;  %s1901_s1 = smov 96   ;;  %s1903_s19 = smov 32   ;;  %vm1416_vm3 = vcmask 130048   ;;  %vm1419_vm4 = vcmask 195584  }
   0x6   :  { %1675 = vmatprep.subr.mxu1 %v34_v4  ;;  %v2013_v27 = vld [vmem:[%s2233_s2] sm:$0xff]  ;;  %v2026_v32 = vld [vmem:[%s2233_s2 + $0x8] sm:$0xff]  ;;  %s1902_s2 = smov 64   ;;  %s1904_s20 = smov 8   ;;  %vm1450_vm5 = vcmask 523264   ;;  %vm1453_vm6 = vcmask 785408  }
   0x7   :  { %1676 = vmatpush3.msra.mxu1 %v34_v4  ;;  %1713 = vmatpush3.msra.mxu0 %v2013_v27  ;;  %s1905_s21 = smov 16   ;;  %s1906_s22 = smov 24  }
   0x8   :  { %1677 = vmatprep.subr.mxu1 %v33_v5  ;;  %1722 = vmatprep.subr.mxu0 %v1899_v3 }
   0x9   :  { %1678 = vmatpush3.msra.mxu1 %v33_v5 }
   0xa   :  { %1680 = vmatmul.mubr.msk.f32.vlgmr.msra.gmra.mxu1 %vm37_vm0, %v32_v6  ;;  %1682 = vmatprep.subr.mxu1 %v1899_v3 }
   0xb   :  { %1683 = vmatpush3.xpose.msk.msra.mxu1 %vm37_vm0, %v1973_v7  ;;  %1684 = vmatprep.mubr.msk.f32.mxu1 %vm1900_vm1, %v1899_v3 }
   0xc   :  { %1687 = vmatprep.subr.mxu1 %v1899_v3 }
  0xca   :  { %v1984_v8 = vpop.f32.mrf.mxu1 }
  0xcc   :  { %v1991_v10 = vpop.f32.mrf.mxu1 }
  0xcd   :  { %1685 = vmatmul.mubr.msk.f32.vlgmr.msra.gmra.mxu1 %vm37_vm0, %v1991_v10 }
  0xce   :  { %1688 = vmatpush3.xpose.msk.msra.mxu1 %vm37_vm0, %v1989_v9  ;;  %1689 = vmatprep.mubr.msk.f32.mxu1 %vm1900_vm1, %v1899_v3 }
  0xcf   :  { %1692 = vmatprep.subr.mxu1 %v1899_v3 }
  0xd1   :  { %1690 = vmatmul.mubr.msk.f32.vlgmr.msra.gmra.mxu1 %vm37_vm0, %v1984_v8 }
  0xd2   :  { %1694 = vmatprep.mubr.msk.f32.mxu1 %vm1900_vm1, %v1899_v3  ;;  %1693 = vmatpush3.msra.mxu1 %v2013_v27 }
  0xd3   :  { %1697 = vmatprep.subr.mxu1 %v1899_v3 }
 0x18d   :  { %v191_v11 = vpop.f32.mrf.mxu1 }
 0x18e   :  { %v272_v12 = vsel %vm271_vm2, %v191_v11, -inf }
 0x18f   :  { %273 = vmax.xlane.f32.xlu0 %v272_v12  ;;  %v1686_v13 = vpop.f32.mrf.mxu1 }
 0x191   :  { %v267_v14 = vpop.f32.mrf.mxu1 }
 0x192   :  { %v275_v15 = vsel %vm271_vm2, %v267_v14, -inf }
 0x193   :  { %276 = vmax.xlane.f32.xlu0 %v275_v15  ;;  %v1691_v16 = vpop.f32.mrf.mxu1 }
 0x1a9   :  { %442 = vrot.lane.b32.xlu0 %v1991_v10, %s1901_s1 }
 0x218   :  { %v274_v17 = vpop.xlane.xlu0 %273 }
 0x219   :  { %v278_v18 = vsub.f32 %v191_v11, %v274_v17 }
 0x21b   :  { %v280_v19 = vmul.f32 1.442695, %v278_v18 }
 0x21c   :  { %v277_v20 = vpop.xlane.xlu0 %276 }
 0x21d   :  { %1823 = vpow2.f32 %v280_v19  ;;  %v279_v21 = vsub.f32 %v267_v14, %v277_v20 }
 0x21f   :  { %v282_v22 = vmul.f32 1.442695, %v279_v21 }
 0x220   :  { %v443_v35 = vpop.permute.xlu0 %442 }
 0x221   :  { %1825 = vpow2.f32 %v282_v22 }
 0x22a   :  { %v1824_v23 = vpop.eup %1823 }
 0x22b   :  { %v284_v24 = vsel %vm271_vm2, %v1824_v23, 0.0 }
 0x22c   :  { %285 = vadd.xlane.f32.xlu1 %v284_v24 }
 0x22e   :  { %v1826_v25 = vpop.eup %1825 }
 0x22f   :  { %v287_v26 = vsel %vm271_vm2, %v1826_v25, 0.0 }
 0x230   :  { %288 = vadd.xlane.f32.xlu1 %v287_v26 }
 0x241   :  { %516 = vrot.lane.b32.xlu1 %v1984_v8, %s1901_s1 }
 0x2b5   :  { %v286_v28 = vpop.xlane.xlu1 %285 }
 0x2b6   :  { %1827 = vrcp.f32 %v286_v28 }
 0x2b9   :  { %v289_v29 = vpop.xlane.xlu1 %288 }
 0x2ba   :  { %1829 = vrcp.f32 %v289_v29 }
 0x2bd   :  { %v517_v36 = vpop.permute.xlu1 %516 }
 0x2c3   :  { %v1828_v30 = vpop.eup %1827 }
 0x2c4   :  { %v2021_v31 = vmul.f32 %v1828_v30, %v1824_v23 }
 0x2c6   :  { %1695 = vmatmul.mubr.msk.f32.vlgmr.msra.gmra.mxu1 %vm271_vm2, %v2021_v31 }
 0x2c7   :  { %v1830_v33 = vpop.eup %1829  ;;  %1698 = vmatpush3.msra.mxu1 %v2026_v32  ;;  %1699 = vmatprep.mubr.msk.f32.mxu1 %vm1900_vm1, %v1899_v3 }
 0x2c8   :  { %1702 = vmatprep.subr.mxu1 %v1899_v3  ;;  %v2034_v34 = vmul.f32 %v1830_v33, %v1826_v25 }
 0x2ca   :  { %1700 = vmatmul.mubr.msk.f32.vlgmr.msra.gmra.mxu1 %vm271_vm2, %v2034_v34 }
 0x2cb   :  { %1703 = vmatpush3.xpose.msk.msra.mxu1 %vm37_vm0, %v1973_v7  ;;  %1704 = vmatprep.mubr.msk.f32.mxu1 %vm1900_vm1, %v1899_v3 }
 0x2cc   :  { %1707 = vmatprep.subr.mxu1 %v1899_v3 }
 0x2ce   :  { %1705 = vmatmul.mubr.msk.f32.vlgmr.msra.gmra.mxu1 %vm37_vm0, %v443_v35 }
 0x2cf   :  { %1708 = vmatpush3.xpose.msk.msra.mxu1 %vm37_vm0, %v1989_v9  ;;  %1709 = vmatprep.mubr.msk.f32.mxu1 %vm1900_vm1, %v1899_v3 }
 0x2d0   :  { %1717 = vmatprep.subr.mxu1 %v1899_v3 }
 0x2d2   :  { %1710 = vmatmul.mubr.msk.f32.vlgmr.msra.gmra.mxu1 %vm37_vm0, %v517_v36 }
 0x2d3   :  { %1718 = vmatpush3.msra.mxu1 %v2026_v32  ;;  %1719 = vmatprep.mubr.msk.f32.mxu1 %vm1900_vm1, %v1899_v3 }
 0x2d4   :  { %1727 = vmatprep.subr.mxu1 %v1899_v3 }
 0x386   :  { %v2054_v37 = vpop.f32.mrf.mxu1 }
 0x388   :  { %v1696_v38 = vpop.f32.mrf.mxu1 }
 0x38a   :  { %v2056_v39 = vpop.f32.mrf.mxu1 }
 0x38c   :  { %v1701_v40 = vpop.f32.mrf.mxu1 }
 0x38e   :  { %v512_v41 = vpop.f32.mrf.mxu1 }
 0x38f   :  { %v590_v42 = vsel %vm271_vm2, %v512_v41, -inf }
 0x390   :  { %591 = vmax.xlane.f32.xlu1 %v590_v42  ;;  %v1706_v43 = vpop.f32.mrf.mxu1 }
 0x392   :  { %v586_v44 = vpop.f32.mrf.mxu1 }
 0x393   :  { %v593_v45 = vsel %vm271_vm2, %v586_v44, -inf }
 0x394   :  { %594 = vmax.xlane.f32.xlu0 %v593_v45  ;;  %v1711_v46 = vpop.f32.mrf.mxu1 }
 0x419   :  { %v592_v47 = vpop.xlane.xlu1 %591 }
 0x41a   :  { %v596_v48 = vsub.f32 %v512_v41, %v592_v47 }
 0x41c   :  { %v598_v49 = vmul.f32 1.442695, %v596_v48 }
 0x41d   :  { %v595_v50 = vpop.xlane.xlu0 %594 }
 0x41e   :  { %1831 = vpow2.f32 %v598_v49  ;;  %v597_v51 = vsub.f32 %v586_v44, %v595_v50 }
 0x420   :  { %v600_v52 = vmul.f32 1.442695, %v597_v51 }
 0x422   :  { %1833 = vpow2.f32 %v600_v52 }
 0x42b   :  { %v1832_v53 = vpop.eup %1831 }
 0x42c   :  { %v602_v54 = vsel %vm271_vm2, %v1832_v53, 0.0 }
 0x42d   :  { %603 = vadd.xlane.f32.xlu0 %v602_v54 }
 0x42f   :  { %v1834_v55 = vpop.eup %1833 }
 0x430   :  { %v605_v56 = vsel %vm271_vm2, %v1834_v55, 0.0 }
 0x431   :  { %606 = vadd.xlane.f32.xlu1 %v605_v56 }
 0x442   :  { %834 = vrot.lane.b32.xlu1 %v1984_v8, %s1902_s2 }
 0x443   :  { %760 = vrot.lane.b32.xlu0 %v1991_v10, %s1902_s2 }
 0x4b6   :  { %v604_v57 = vpop.xlane.xlu0 %603 }
 0x4b7   :  { %1835 = vrcp.f32 %v604_v57 }
 0x4ba   :  { %v607_v58 = vpop.xlane.xlu1 %606  ;;  %v761_v63 = vpop.permute.xlu0 %760 }
 0x4bb   :  { %1837 = vrcp.f32 %v607_v58 }
 0x4be   :  { %v835_v0 = vpop.permute.xlu1 %834 }
 0x4c4   :  { %v1836_v59 = vpop.eup %1835 }
 0x4c5   :  { %v2066_v60 = vmul.f32 %v1836_v59, %v1832_v53 }
 0x4c7   :  { %1715 = vmatmul.mubr.msk.f32.vlgmr.msra.gmra.mxu0 %vm271_vm2, %v2066_v60 }
 0x4c8   :  { %v1838_v61 = vpop.eup %1837  ;;  %1723 = vmatpush3.xpose.msk.msra.mxu0 %vm37_vm0, %v1973_v7  ;;  %1724 = vmatprep.mubr.msk.f32.mxu0 %vm1900_vm1, %v1899_v3 }
 0x4c9   :  { %v2074_v62 = vmul.f32 %v1838_v61, %v1834_v55  ;;  %1732 = vmatprep.subr.mxu0 %v1899_v3 }
 0x4cb   :  { %1720 = vmatmul.mubr.msk.f32.vlgmr.msra.gmra.mxu1 %vm271_vm2, %v2074_v62  ;;  %1725 = vmatmul.mubr.msk.f32.vlgmr.msra.gmra.mxu0 %vm37_vm0, %v761_v63  ;;  %v1470_v63 = vld [vmem:[%s2235_s4 + $0x70] sm:$0xff] }
 0x4cc   :  { %1728 = vmatpush3.xpose.msk.msra.mxu1 %vm37_vm0, %v1989_v9  ;;  %1729 = vmatprep.mubr.msk.f32.mxu1 %vm1900_vm1, %v1899_v3 }
 0x4cd   :  { %1733 = vmatpush3.msra.mxu0 %v2013_v27  ;;  %1734 = vmatprep.mubr.msk.f32.mxu0 %vm1900_vm1, %v1899_v3 }
 0x4ce   :  { %1737 = vmatprep.subr.mxu1 %v1899_v3  ;;  %1742 = vmatprep.subr.mxu0 %v1899_v3 }
 0x4cf   :  { %1730 = vmatmul.mubr.msk.f32.vlgmr.msra.gmra.mxu1 %vm37_vm0, %v835_v0  ;;  %v1469_v0 = vld [vmem:[%s2235_s4 + $0x68] sm:$0xff] }
 0x4d0   :  { %1738 = vmatpush3.msra.mxu1 %v2026_v32  ;;  %1739 = vmatprep.mubr.msk.f32.mxu1 %vm1900_vm1, %v1899_v3 }
 0x4d1   :  { %1747 = vmatprep.subr.mxu1 %v1899_v3 }
 0x587   :  { %v2094_v1 = vpop.f32.mrf.mxu0 }
 0x589   :  { %v1716_v2 = vpop.f32.mrf.mxu0 }
 0x58a   :  { %v1467_v2 = vld [vmem:[%s2235_s4 + $0x58] sm:$0xff] }
 0x58b   :  { %v2096_v4 = vpop.f32.mrf.mxu1  ;;  %v830_v5 = vpop.f32.mrf.mxu0 }
 0x58c   :  { %v1808_v6 = vpack.i.bf16 %v2096_v4, %v2094_v1  ;;  %v908_v11 = vsel %vm271_vm2, %v830_v5, -inf  ;;  %v1468_v1 = vld [vmem:[%s2235_s4 + $0x60] sm:$0xff]  ;;  %v1466_v4 = vld [vmem:[%s2235_s4 + $0x50] sm:$0xff] }
 0x58d   :  { %909 = vmax.xlane.f32.xlu1 %v908_v11  ;;  %v1721_v12 = vpop.f32.mrf.mxu1  ;;  %v1726_v13 = vpop.f32.mrf.mxu0  ;;  %v1463_v11 = vld [vmem:[%s2235_s4 + $0x38] sm:$0xff] }
 0x58e   :  { %v1462_v12 = vld [vmem:[%s2235_s4 + $0x30] sm:$0xff]  ;;  %v1461_v13 = vld [vmem:[%s2235_s4 + $0x28] sm:$0xff] }
 0x58f   :  { %v904_v14 = vpop.f32.mrf.mxu1 }
 0x590   :  { %v911_v15 = vsel %vm271_vm2, %v904_v14, -inf }
 0x591   :  { %912 = vmax.xlane.f32.xlu0 %v911_v15  ;;  %v1731_v16 = vpop.f32.mrf.mxu1  ;;  %v1460_v15 = vld [vmem:[%s2235_s4 + $0x20] sm:$0xff] }
 0x592   :  { %v1459_v16 = vld [vmem:[%s2235_s4 + $0x18] sm:$0xff] }
 0x616   :  { %v910_v17 = vpop.xlane.xlu1 %909 }
 0x617   :  { %v914_v18 = vsub.f32 %v830_v5, %v910_v17  ;;  %v1465_v5 = vld [vmem:[%s2235_s4 + $0x48] sm:$0xff]  ;;  %v1458_v17 = vld [vmem:[%s2235_s4 + $0x10] sm:$0xff] }
 0x619   :  { %v916_v19 = vmul.f32 1.442695, %v914_v18 }
 0x61a   :  { %v913_v20 = vpop.xlane.xlu0 %912 }
 0x61b   :  { %1839 = vpow2.f32 %v916_v19  ;;  %v915_v21 = vsub.f32 %v904_v14, %v913_v20 }
 0x61d   :  { %v918_v22 = vmul.f32 1.442695, %v915_v21 }
 0x61f   :  { %1841 = vpow2.f32 %v918_v22 }
 0x628   :  { %v1840_v23 = vpop.eup %1839 }
 0x629   :  { %v920_v24 = vsel %vm271_vm2, %v1840_v23, 0.0 }
 0x62a   :  { %921 = vadd.xlane.f32.xlu0 %v920_v24  ;;  %v1457_v24 = vld [vmem:[%s2235_s4 + $0x8] sm:$0xff] }
 0x62c   :  { %v1842_v25 = vpop.eup %1841 }
 0x62d   :  { %v923_v26 = vsel %vm271_vm2, %v1842_v25, 0.0 }
 0x62e   :  { %924 = vadd.xlane.f32.xlu1 %v923_v26 }
 0x63f   :  { %1152 = vrot.lane.b32.xlu1 %v1984_v8, %s1903_s19 }
 0x640   :  { %1078 = vrot.lane.b32.xlu0 %v1991_v10, %s1903_s19 }
 0x6b3   :  { %v922_v28 = vpop.xlane.xlu0 %921 }
 0x6b4   :  { %1843 = vrcp.f32 %v922_v28 }
 0x6b7   :  { %v925_v29 = vpop.xlane.xlu1 %924  ;;  %v1079_v10 = vpop.permute.xlu0 %1078 }
 0x6b8   :  { %1845 = vrcp.f32 %v925_v29 }
 0x6c1   :  { %v1844_v30 = vpop.eup %1843 }
 0x6c2   :  { %v2108_v33 = vmul.f32 %v1844_v30, %v1840_v23 }
 0x6c4   :  { %1735 = vmatmul.mubr.msk.f32.vlgmr.msra.gmra.mxu0 %vm271_vm2, %v2108_v33 }
 0x6c5   :  { %v1846_v35 = vpop.eup %1845  ;;  %1743 = vmatpush3.xpose.msk.msra.mxu0 %vm37_vm0, %v1973_v7  ;;  %1744 = vmatprep.mubr.msk.f32.mxu0 %vm1900_vm1, %v1899_v3  ;;  %v1153_v7 = vpop.permute.xlu1 %1152 }
 0x6c6   :  { %v931_v8 = vmul.f32 %v1846_v35, %v1842_v25  ;;  %1752 = vmatprep.subr.mxu0 %v1899_v3  ;;  %v1456_v25 = vld [vmem:[%s2235_s4] sm:$0xff] }
 0x6c8   :  { %1740 = vmatmul.mubr.msk.f32.vlgmr.msra.gmra.mxu1 %vm271_vm2, %v931_v8  ;;  %1745 = vmatmul.mubr.msk.f32.vlgmr.msra.gmra.mxu0 %vm37_vm0, %v1079_v10 }
 0x6c9   :  { %1748 = vmatpush3.xpose.msk.msra.mxu1 %vm37_vm0, %v1989_v9  ;;  %1749 = vmatprep.mubr.msk.f32.mxu1 %vm1900_vm1, %v1899_v3 }
 0x6ca   :  { %1753 = vmatpush3.msra.mxu0 %v2013_v27  ;;  %1754 = vmatprep.mubr.msk.f32.mxu0 %vm1900_vm1, %v1899_v3 }
 0x6cb   :  { %1757 = vmatprep.subr.mxu1 %v1899_v3 }
 0x6cc   :  { %1750 = vmatmul.mubr.msk.f32.vlgmr.msra.gmra.mxu1 %vm37_vm0, %v1153_v7 }
 0x6cd   :  { %1758 = vmatpush3.msra.mxu1 %v2026_v32  ;;  %1759 = vmatprep.mubr.msk.f32.mxu1 %vm1900_vm1, %v1899_v3 }
 0x784   :  { %v1001_v36 = vpop.f32.mrf.mxu0 }
 0x786   :  { %v1736_v9 = vpop.f32.mrf.mxu0 }
 0x788   :  { %v1074_v38 = vpop.f32.mrf.mxu1  ;;  %v1148_v40 = vpop.f32.mrf.mxu0 }
 0x789   :  { %v1813_v41 = vpack.i.bf16 %v1074_v38, %v1001_v36  ;;  %v1226_v27 = vsel %vm271_vm2, %v1148_v40, -inf }
 0x78a   :  { %1227 = vmax.xlane.f32.xlu1 %v1226_v27  ;;  %v1741_v42 = vpop.f32.mrf.mxu1  ;;  %v1746_v43 = vpop.f32.mrf.mxu0 }
 0x78c   :  { %v1222_v44 = vpop.f32.mrf.mxu1 }
 0x78d   :  { %v1229_v45 = vsel %vm271_vm2, %v1222_v44, -inf }
 0x78e   :  { %1230 = vmax.xlane.f32.xlu0 %v1229_v45  ;;  %v1751_v46 = vpop.f32.mrf.mxu1 }
 0x813   :  { %v1228_v47 = vpop.xlane.xlu1 %1227 }
 0x814   :  { %v1232_v32 = vsub.f32 %v1148_v40, %v1228_v47 }
 0x816   :  { %v1234_v48 = vmul.f32 1.442695, %v1232_v32 }
 0x817   :  { %v1231_v49 = vpop.xlane.xlu0 %1230 }
 0x818   :  { %1847 = vpow2.f32 %v1234_v48  ;;  %v1233_v3 = vsub.f32 %v1222_v44, %v1231_v49 }
 0x81a   :  { %v1236_v50 = vmul.f32 1.442695, %v1233_v3 }
 0x81c   :  { %1849 = vpow2.f32 %v1236_v50 }
 0x825   :  { %v1848_v51 = vpop.eup %1847 }
 0x826   :  { %v1238_v52 = vsel %vm271_vm2, %v1848_v51, 0.0 }
 0x827   :  { %1239 = vadd.xlane.f32.xlu0 %v1238_v52 }
 0x829   :  { %v1850_v53 = vpop.eup %1849 }
 0x82a   :  { %v1241_v54 = vsel %vm271_vm2, %v1850_v53, 0.0 }
 0x82b   :  { %1242 = vadd.xlane.f32.xlu1 %v1241_v54 }
 0x83c   :  { %1814 = vrot.lane.b32.xlu1 %v1813_v41, %s1902_s2 }
 0x83d   :  { %1809 = vrot.lane.b32.xlu0 %v1808_v6, %s1903_s19  ;;  %v1464_v6 = vld [vmem:[%s2235_s4 + $0x40] sm:$0xff] }
 0x841   :  { %1398 = vrot.lane.b32.xlu0 %v2074_v62, %s1904_s20  ;;  %v1471_v62 = vld [vmem:[%s2235_s4 + $0x78] sm:$0xff]  ;;  %s1907_s4 = smov [#allocation4]  }
 0x842   :  { %1762 = vmatprep.subr.mxu0 %v1471_v62 }
 0x845   :  { %1404 = vrot.lane.b32.xlu0 %v931_v8, %s1905_s21 }
 0x8b0   :  { %v1240_v55 = vpop.xlane.xlu0 %1239 }
 0x8b1   :  { %1851 = vrcp.f32 %v1240_v55 }
 0x8b4   :  { %v1243_v56 = vpop.xlane.xlu1 %1242  ;;  %v1810_v14 = vpop.permute.xlu0 %1809 }
 0x8b5   :  { %1853 = vrcp.f32 %v1243_v56  ;;  %v1812_v8 = vunpack.i.h.bf16 %v1810_v14  ;;  %v1811_v10 = vunpack.i.l.bf16 %v1810_v14 }
 0x8b7   :  { %v1449_v38 = vsel %vm37_vm0, %v2056_v39, %v1812_v8 }
 0x8b8   :  { %v1399_v18 = vpop.permute.xlu0 %1398  ;;  %v1815_v35 = vpop.permute.xlu1 %1814 }
 0x8b9   :  { %v1415_v20 = vsel %vm271_vm2, %v2034_v34, %v1399_v18  ;;  %v1817_v7 = vunpack.i.h.bf16 %v1815_v35  ;;  %v1816_v36 = vunpack.i.l.bf16 %v1815_v35 }
 0x8bb   :  { %v1452_v27 = vsel %vm1450_vm5, %v1449_v38, %v1817_v7 }
 0x8bc   :  { %v1405_v19 = vpop.permute.xlu0 %1404 }
 0x8bd   :  { %v1418_v21 = vsel %vm1416_vm3, %v1415_v20, %v1405_v19 }
 0x8be   :  { %v1852_v57 = vpop.eup %1851 }
 0x8bf   :  { %v2143_v58 = vmul.f32 %v1852_v57, %v1848_v51 }
 0x8c1   :  { %1755 = vmatmul.mubr.msk.f32.vlgmr.msra.gmra.mxu0 %vm271_vm2, %v2143_v58 }
 0x8c2   :  { %v1854_v59 = vpop.eup %1853  ;;  %1763 = vmatpush3.msra.mxu0 %v1471_v62 }
 0x8c3   :  { %v1249_v61 = vmul.f32 %v1854_v59, %v1850_v53  ;;  %1764 = vmatprep.subr.mxu0 %v1470_v63 }
 0x8c4   :  { %1765 = vmatpush3.msra.mxu0 %v1470_v63 }
 0x8c5   :  { %1410 = vrot.lane.b32.xlu0 %v1249_v61, %s1906_s22  ;;  %1760 = vmatmul.mubr.msk.f32.vlgmr.msra.gmra.mxu1 %vm271_vm2, %v1249_v61 }
 0x8c6   :  { %1766 = vmatprep.subr.mxu0 %v1469_v0 }
 0x8c7   :  { %1767 = vmatpush3.msra.mxu0 %v1469_v0 }
 0x8c8   :  { %1768 = vmatprep.subr.mxu0 %v1468_v1 }
 0x8c9   :  { %1769 = vmatpush3.msra.mxu0 %v1468_v1 }
 0x8ca   :  { %1770 = vmatprep.subr.mxu0 %v1467_v2 }
 0x8cb   :  { %1771 = vmatpush3.msra.mxu0 %v1467_v2 }
 0x8cc   :  { %1772 = vmatprep.subr.mxu0 %v1466_v4 }
 0x8cd   :  { %1773 = vmatpush3.msra.mxu0 %v1466_v4 }
 0x8ce   :  { %1774 = vmatprep.subr.mxu0 %v1465_v5 }
 0x8cf   :  { %1775 = vmatpush3.msra.mxu0 %v1465_v5 }
 0x8d0   :  { %1776 = vmatprep.subr.mxu0 %v1464_v6 }
 0x8d1   :  { %1777 = vmatpush3.msra.mxu0 %v1464_v6 }
 0x8d2   :  { %1778 = vmatprep.subr.mxu0 %v1463_v11 }
 0x8d3   :  { %1779 = vmatpush3.msra.mxu0 %v1463_v11 }
 0x8d4   :  { %1780 = vmatprep.subr.mxu0 %v1462_v12 }
 0x8d5   :  { %1781 = vmatpush3.msra.mxu0 %v1462_v12 }
 0x8d6   :  { %1782 = vmatprep.subr.mxu0 %v1461_v13 }
 0x8d7   :  { %1783 = vmatpush3.msra.mxu0 %v1461_v13 }
 0x8d8   :  { %1784 = vmatprep.subr.mxu0 %v1460_v15 }
 0x8d9   :  { %1785 = vmatpush3.msra.mxu0 %v1460_v15 }
 0x8da   :  { %1786 = vmatprep.subr.mxu0 %v1459_v16 }
 0x8db   :  { %1787 = vmatpush3.msra.mxu0 %v1459_v16 }
 0x8dc   :  { %1788 = vmatprep.subr.mxu0 %v1458_v17 }
 0x8dd   :  { %1789 = vmatpush3.msra.mxu0 %v1458_v17 }
 0x8de   :  { %1790 = vmatprep.subr.mxu0 %v1457_v24 }
 0x8df   :  { %1791 = vmatpush3.msra.mxu0 %v1457_v24 }
 0x8e0   :  { %1792 = vmatprep.subr.mxu0 %v1456_v25 }
 0x8e1   :  { %1793 = vmatpush3.msra.mxu0 %v1456_v25 }
 0x937   :  { %v1411_v22 = vpop.permute.xlu0 %1410 }
 0x938   :  { %v1421_v23 = vsel %vm1419_vm4, %v1418_v21, %v1411_v22 }
 0x939   :  { %1423 = vst.msk [vmem:[#allocation4 + $0x8] sm:$0xff] %vm37_vm0, %v1421_v23 }
 0x981   :  { %v1319_v34 = vpop.f32.mrf.mxu0 }
 0x983   :  { %v1756_v26 = vpop.f32.mrf.mxu0 }
 0x985   :  { %v1392_v28 = vpop.f32.mrf.mxu1 }
 0x986   :  { %v1818_v29 = vpack.i.bf16 %v1392_v28, %v1319_v34 }
 0x987   :  { %v1761_v30 = vpop.f32.mrf.mxu1 }
 0x988   :  { %1819 = vrot.lane.b32.xlu1 %v1818_v29, %s1901_s1  ;;  %s1573_s1 = sshll.u32 %s1907_s4, 4  ;;  %s1574_s1 = int_to_ptr.vmem [resolvable:$true] %s1573_s1 }
 0x989   :  { %p1860_p1 = scmp.lt.s32.totalorder %s1574_s1, %s1574_s1 }
 0x98c   :  { %1396 = vrot.lane.b32.xlu1 %v2066_v60, %s1904_s20  ;;  %v1448_v60 = vsel %vm37_vm0, %v2054_v37, %v1811_v10 }
 0x990   :  { %1402 = vrot.lane.b32.xlu1 %v2108_v33, %s1905_s21  ;;  %v1451_v33 = vsel %vm1450_vm5, %v1448_v60, %v1816_v36  ;;  %s1855_s21 = scalar_lea.vmem %s1574_s1, 256 }
 0x991   :  { %p1856_p0 = scmp.ne.s32.totalorder %s1574_s1, %s1855_s21  ;;  %p1861_p2 = scmp.lt.s32.totalorder %s1855_s21, %s1855_s21 }
 0x993   :  { %p1862_p3 = por %p1861_p2, %p1860_p1 }
 0x994   :  { %1408 = vrot.lane.b32.xlu1 %v2143_v58, %s1906_s22 }
 0x995   :  { %p1863_p4 = pnand %p1862_p3, %p1856_p0 }
 0x9fa   :  { %v1820_v9 = vpop.permute.xlu1 %1819 }
 0x9fb   :  { %v1822_v40 = vunpack.i.h.bf16 %v1820_v9  ;;  %v1821_v41 = vunpack.i.l.bf16 %v1820_v9 }
 0x9fd   :  { %v1454_v42 = vsel %vm1453_vm6, %v1451_v33, %v1821_v41  ;;  %v1455_v43 = vsel %vm1453_vm6, %v1452_v27, %v1822_v40 }
 0x9fe   :  { %v1397_v44 = vpop.permute.xlu1 %1396  ;;  %1794 = vmatprep.mubr.f32.mxu0 %v1454_v42 }
 0x9ff   :  { %1795 = vmatmul.mubr.f32.vlgmr.msra.gmra.mxu0 %v1455_v43  ;;  %v1414_v46 = vsel %vm271_vm2, %v2021_v31, %v1397_v44 }
 0xa02   :  { %v1403_v45 = vpop.permute.xlu1 %1402 }
 0xa03   :  { %v1417_v47 = vsel %vm1416_vm3, %v1414_v46, %v1403_v45 }
 0xa06   :  { %v1409_v32 = vpop.permute.xlu1 %1408 }
 0xa07   :  { %v1420_v39 = vsel %vm1419_vm4, %v1417_v47, %v1409_v32 }
 0xa08   :  { %1422 = vst.msk [vmem:[#allocation4] sm:$0xff] %vm37_vm0, %v1420_v39 }
 0xa09   :  { %1866 = shalt.err (!%p1863_p4)
}
 0xa0a   :  { %s1908_s22 = smov 128   ;;  %v1614_v31 = vld [vmem:[%s2236_s5] ss:$0 sm:$0xff]  ;;  %s1909_s13 = smov [#allocation2]  }
 0xa0b   :  { %1579 = dma.vmem_to_hbm [thread:$0]  %s1574_s1, 256, %s2238_s7, [#allocation5], %s1908_s22, %s1908_s22, %s1904_s20  }
 0xa0c   :  { %s1561_s14 = sshll.u32 %s1909_s13, 4  ;;  %s1562_s14 = int_to_ptr.vmem [resolvable:$true] %s1561_s14 }
 0xa0d   :  { %s1875_s0 = scalar_lea.vmem %s1562_s14, 256  ;;  %p1880_p6 = scmp.lt.s32.totalorder %s1562_s14, %s1562_s14 }
 0xa0e   :  { %p1876_p5 = scmp.ne.s32.totalorder %s1562_s14, %s1875_s0  ;;  %p1881_p7 = scmp.lt.s32.totalorder %s1875_s0, %s1875_s0 }
 0xa10   :  { %p1882_p8 = por %p1881_p7, %p1880_p6 }
 0xa12   :  { %p1883_p9 = pnand %p1882_p8, %p1876_p5 }
 0xabf   :  { %v1796_v37 = vpop.f32.mrf.mxu0 }
 0xac0   :  { %v1551_v48 = vadd.f32 %v1796_v37, %v1614_v31 }
 0xac1   :  { %v1545_v49 = vpop.f32.mrf.mxu0 }
 0xac2   :  { %1555 = vst.msk [vmem:[#allocation2 + $0x8] sm:$0xff] %vm37_vm0, %v1551_v48  ;;  %v1546_v3 = vadd.f32 %v1614_v31, %v1545_v49 }
 0xac4   :  { %1554 = vst.msk [vmem:[#allocation2] sm:$0xff] %vm37_vm0, %v1546_v3 }
 0xac5   :  { %1886 = shalt.err (!%p1883_p9)
}
 0xac6   :  { %1567 = dma.vmem_to_hbm [thread:$0]  %s1562_s14, 256, %s2237_s6, [#allocation3], %s1908_s22, %s1908_s22, %s1904_s20  }
 0xac7   :  { %1895 = dma.done.wait [#allocation3], 256  }
 0xac8   :  { %1896 = vsyncadd [#allocation3], 4294967040 }
 0xac9   :  { %1897 = dma.done.wait [#allocation5], 256  }
 0xaca   :  { %1898 = vsyncadd [#allocation5], 4294967040 }
 0xacb   :  { %1586 = vsyncpa [#allocation3], 1 }
 0xacc   :  { %1587 = vsyncpa [#allocation5], 1 }

</bundles_post_ra>
